<compile_context>
chip_gen: v6e
topology: v6e:2x2x1
jax: 0.10.0
libtpu: 0.0.40
codegen_flags: <defaults>
</compile_context>

<pallas_src>
import functools

import jax
import jax.numpy as jnp
from jax.experimental import pallas as pl
from jax.experimental.pallas import tpu as pltpu


# ------------------------------ Pallas kernel ------------------------------- #

def _fused_tcn_kernel(*refs, num_layers):
    """Fused TCN stack + 1x1-downsample residual for one row tile.

    refs (inputs then output):
      x_ref                 : (bm, T*Cin)   flattened input rows
      W_l, bt_l (l=0..L-1)  : (T*C_{l-1}, T*C_l), (1, T*C_l)
                              block-Toeplitz causal-conv matrix + per-t bias
      Wd, btd               : (T*Cin, T*C_{L-1}), (1, T*C_{L-1})
      o_ref                 : (bm, T*C_{L-1})
    """
    x_ref = refs[0]
    o_ref = refs[-1]

    x = x_ref[...]
    h = x
    for l in range(num_layers):
        w = refs[1 + 2 * l][...]
        bt = refs[2 + 2 * l][...]
        acc = jnp.dot(h, w, preferred_element_type=jnp.float32) + bt
        h = jnp.maximum(acc, 0.0)
        # nn.Dropout: identity at inference time.

    wd = refs[1 + 2 * num_layers][...]
    btd = refs[2 + 2 * num_layers][...]
    res = jnp.dot(x, wd, preferred_element_type=jnp.float32) + btd
    out = jnp.maximum(h + res, 0.0)
    o_ref[...] = out.astype(o_ref.dtype)


# ------------------------------ Wrapper glue -------------------------------- #

def _causal_conv_matrix(w, T, dilation):
    """(K, Cin, Cout) per-tap weights -> dense (T*Cin, T*Cout) block-Toeplitz
    matrix implementing the causal dilated conv (left zero-padding baked in)."""
    K, Cin, Cout = w.shape
    Wf = jnp.zeros((T * Cin, T * Cout), dtype=w.dtype)
    for k in range(K):
        s = (K - 1 - k) * dilation          # time lag of tap k
        for t_out in range(T):
            t_in = t_out - s
            if t_in < 0:
                continue                    # causal zero-padding
            Wf = Wf.at[t_in * Cin:(t_in + 1) * Cin,
                       t_out * Cout:(t_out + 1) * Cout].set(w[k])
    return Wf


def _vmem_limit_bytes(bm, T, chans, act_itemsize):
    """Rough per-call VMEM need (double-buffered I/O tiles + weights + acts)."""
    io_tiles = 2 * bm * T * (chans[0] + chans[-1]) * act_itemsize
    w_bytes = sum((T * ci) * (T * co) * 4 + T * co * 4
                  for ci, co in zip(chans[:-1], chans[1:]))
    w_bytes += (T * chans[0]) * (T * chans[-1]) * 4 + T * chans[-1] * 4
    interm = 2 * bm * T * max(chans) * 4
    need = io_tiles + 2 * w_bytes + interm
    # generous headroom; cap at 32 MiB (safe scoped limit on v5e/v6e/v7x)
    return int(min(max(2 * need, 16 * 2 ** 20), 32 * 2 ** 20))


def temporal_conv_net_forward(x, params, *, kernel_size=2, bm=512):
    """x: (B, N, T, F) -> (B, N, T, num_channels[-1])  (eval-mode forward)."""
    B, N, T, Fin = x.shape
    M = B * N

    if params["downsample"] is None:
        # Exactly mirrors the PyTorch precedence quirk:
        #   relu(network(y) + downsample(y) if downsample else y)
        # i.e. without a downsample the network output is discarded.
        return jnp.maximum(x, 0.0)

    # --- trace-time glue: flatten weights into lane-dense matmul operands ---
    chans = [Fin] + [w.shape[-1] for (w, _) in params["layers"]]
    operands, in_specs = [], []
    for i, (w, b) in enumerate(params["layers"]):
        d = 2 ** i
        Cout = w.shape[-1]
        Wf = _causal_conv_matrix(w, T, d)              # (T*Cin, T*Cout)
        bt = jnp.tile(b, T).reshape(1, T * Cout)       # per-timestep bias
        operands += [Wf, bt]
        in_specs += [pl.BlockSpec(Wf.shape, lambda i_: (0, 0)),
                     pl.BlockSpec(bt.shape, lambda i_: (0, 0))]
    wd, bd = params["downsample"]
    Cl = wd.shape[-1]
    Wd = jnp.kron(jnp.eye(T, dtype=wd.dtype), wd)      # (T*Fin, T*Cl) 1x1 conv
    btd = jnp.tile(bd, T).reshape(1, T * Cl)
    operands += [Wd, btd]
    in_specs += [pl.BlockSpec(Wd.shape, lambda i_: (0, 0)),
                 pl.BlockSpec(btd.shape, lambda i_: (0, 0))]

    y = x.reshape(M, T * Fin)                          # contiguous reshape (free)

    # Row tile: as large as useful, multiple of 8, clamped to M.
    assert bm % 8 == 0
    bm_eff = M if M <= bm else bm
    grid = (pl.cdiv(M, bm_eff),)

    vmem = _vmem_limit_bytes(bm_eff, T, chans, jnp.dtype(x.dtype).itemsize)

    out_flat = pl.pallas_call(
        functools.partial(_fused_tcn_kernel, num_layers=len(params["layers"])),
        out_shape=jax.ShapeDtypeStruct((M, T * Cl), x.dtype),
        grid=grid,
        in_specs=[pl.BlockSpec((bm_eff, T * Fin), lambda i_: (i_, 0))] + in_specs,
        out_specs=pl.BlockSpec((bm_eff, T * Cl), lambda i_: (i_, 0)),
        compiler_params=pltpu.CompilerParams(
            dimension_semantics=("parallel",),
            vmem_limit_bytes=vmem),
    )(y, *operands)

    return out_flat.reshape(B, N, T, Cl)


# ------------------------- Deterministic parameters ------------------------- #

def init_params(key, num_inputs, num_channels, kernel_size=2):
    params = {"layers": []}
    in_ch = num_inputs
    for out_ch in num_channels:
        key, kw, kb = jax.random.split(key, 3)
        # Conv2d weight (out, in, 1, K) with normal(0, 0.01); stored as (K, in, out).
        w = 0.01 * jax.random.normal(kw, (kernel_size, in_ch, out_ch), jnp.float32)
        b = 0.01 * jax.random.normal(kb, (out_ch,), jnp.float32)
        params["layers"].append((w, b))
        in_ch = out_ch
    if num_inputs != num_channels[-1]:
        key, kw, kb = jax.random.split(key, 3)
        wd = 0.01 * jax.random.normal(kw, (num_inputs, num_channels[-1]), jnp.float32)
        bd = 0.01 * jax.random.normal(kb, (num_channels[-1],), jnp.float32)
        params["downsample"] = (wd, bd)
    else:
        params["downsample"] = None
    return params


# ------------------------------ Reference (JAX) ----------------------------- #

def reference_forward(x, params, kernel_size=2):
    B, N, T, Fin = x.shape
    y = x.reshape(B * N, T, Fin).astype(jnp.float32)
    h = y
    for i, (w, b) in enumerate(params["layers"]):
        d = 2 ** i
        pad = (kernel_size - 1) * d
        hp = jnp.pad(h, ((0, 0), (pad, 0), (0, 0)))
        acc = jnp.zeros(h.shape[:2] + (w.shape[-1],), jnp.float32) + b
        for k in range(kernel_size):
            xs = hp[:, k * d:k * d + T, :]
            acc = acc + jnp.einsum("mtc,cd->mtd", xs, w[k])
        h = jnp.maximum(acc, 0.0)
    if params["downsample"] is not None:
        wd, bd = params["downsample"]
        res = jnp.einsum("mtc,cd->mtd", y, wd) + bd
        out = jnp.maximum(h + res, 0.0)
    else:
        out = jnp.maximum(y, 0.0)
    return out.reshape(B, N, T, -1)


# ---------------------------------- Main ------------------------------------ #

if __name__ == "__main__":
    key = jax.random.PRNGKey(0)
    kernel_size = 2
    num_channels = (16, 32)

    # -- case 1: spec-sized demo (single grid step) -------------------------- #
    B, N, T, Fin = 2, 16, 8, 4
    kx, kp = jax.random.split(key)
    x = jax.random.normal(kx, (B, N, T, Fin), jnp.float32)
    params = init_params(kp, Fin, num_channels, kernel_size=kernel_size)

    out = jax.block_until_ready(
        temporal_conv_net_forward(x, params, kernel_size=kernel_size))
    ref = reference_forward(x, params, kernel_size=kernel_size)
    assert out.shape == (B, N, T, num_channels[-1]), out.shape
    assert jnp.allclose(out, ref, rtol=2e-3, atol=2e-3), "mismatch (case 1)"

    # -- case 2: multi-step parallel grid, M not divisible by bm ------------- #
    B2, N2, T2, Fin2 = 3, 50, 8, 4       # M = 150, bm = 64 -> 3 steps, partial tail
    kx2, kp2 = jax.random.split(kp)
    x2 = jax.random.normal(kx2, (B2, N2, T2, Fin2), jnp.float32)
    params2 = init_params(kp2, Fin2, num_channels, kernel_size=kernel_size)

    out2 = jax.block_until_ready(
        temporal_conv_net_forward(x2, params2, kernel_size=kernel_size, bm=64))
    ref2 = reference_forward(x2, params2, kernel_size=kernel_size)
    assert jnp.allclose(out2, ref2, rtol=2e-3, atol=2e-3), "mismatch (case 2)"

    print("KERNEL_OK")
</pallas_src>

<mosaic_0001>
module attributes {stable_mosaic.version = 11 : i64} {
  func.func @_fused_tcn_kernel(%arg0: i32, %arg1: memref<32x32xf32, #tpu.memory_space<vmem>>, %arg2: memref<32x128xf32, #tpu.memory_space<vmem>>, %arg3: memref<1x128xf32, #tpu.memory_space<vmem>>, %arg4: memref<128x256xf32, #tpu.memory_space<vmem>>, %arg5: memref<1x256xf32, #tpu.memory_space<vmem>>, %arg6: memref<32x256xf32, #tpu.memory_space<vmem>>, %arg7: memref<1x256xf32, #tpu.memory_space<vmem>>, %arg8: memref<32x256xf32, #tpu.memory_space<vmem>>) attributes {dimension_semantics = [#tpu.dimension_semantics<parallel>], iteration_bounds = array<i64: 1>, scalar_prefetch = 0 : i64, scratch_operands = 0 : i64, tpu.core_type = #tpu.core_type<tc>, window_params = [{transform_indices = @transform_0, window_bounds = array<i64: 32, 32>}, {pipeline_mode = #tpu.pipeline_mode<synchronous>, transform_indices = @transform_1, window_bounds = array<i64: 32, 128>}, {pipeline_mode = #tpu.pipeline_mode<synchronous>, transform_indices = @transform_2, window_bounds = array<i64: 1, 128>}, {pipeline_mode = #tpu.pipeline_mode<synchronous>, transform_indices = @transform_3, window_bounds = array<i64: 128, 256>}, {pipeline_mode = #tpu.pipeline_mode<synchronous>, transform_indices = @transform_4, window_bounds = array<i64: 1, 256>}, {pipeline_mode = #tpu.pipeline_mode<synchronous>, transform_indices = @transform_5, window_bounds = array<i64: 32, 256>}, {pipeline_mode = #tpu.pipeline_mode<synchronous>, transform_indices = @transform_6, window_bounds = array<i64: 1, 256>}, {transform_indices = @transform_7, window_bounds = array<i64: 32, 256>}]} {
    %c0 = arith.constant 0 : index
    %c0_0 = arith.constant 0 : index
    %0 = vector.load %arg1[%c0, %c0_0] : memref<32x32xf32, #tpu.memory_space<vmem>>, vector<32x32xf32>
    %c0_1 = arith.constant 0 : index
    %c0_2 = arith.constant 0 : index
    %1 = vector.load %arg2[%c0_1, %c0_2] : memref<32x128xf32, #tpu.memory_space<vmem>>, vector<32x128xf32>
    %c0_3 = arith.constant 0 : index
    %c0_4 = arith.constant 0 : index
    %2 = vector.load %arg3[%c0_3, %c0_4] : memref<1x128xf32, #tpu.memory_space<vmem>>, vector<1x128xf32>
    %cst = arith.constant dense<0.000000e+00> : vector<32x128xf32>
    %3 = tpu.matmul %0, %1, %cst {dimension_numbers = #tpu.dot_dimension_numbers<[1], [0], [0], [1], [0, 0, 1, 1], [], []>} : vector<32x32xf32>, vector<32x128xf32>, vector<32x128xf32> -> vector<32x128xf32>
    %4 = vector.broadcast %2 : vector<1x128xf32> to vector<32x128xf32>
    %5 = arith.addf %3, %4 : vector<32x128xf32>
    %cst_5 = arith.constant 0.000000e+00 : f32
    %6 = vector.broadcast %cst_5 : f32 to vector<32x128xf32>
    %7 = arith.maximumf %5, %6 : vector<32x128xf32>
    %c0_6 = arith.constant 0 : index
    %c0_7 = arith.constant 0 : index
    %8 = vector.load %arg4[%c0_6, %c0_7] : memref<128x256xf32, #tpu.memory_space<vmem>>, vector<128x256xf32>
    %c0_8 = arith.constant 0 : index
    %c0_9 = arith.constant 0 : index
    %9 = vector.load %arg5[%c0_8, %c0_9] : memref<1x256xf32, #tpu.memory_space<vmem>>, vector<1x256xf32>
    %cst_10 = arith.constant dense<0.000000e+00> : vector<32x256xf32>
    %10 = tpu.matmul %7, %8, %cst_10 {dimension_numbers = #tpu.dot_dimension_numbers<[1], [0], [0], [1], [0, 0, 1, 1], [], []>} : vector<32x128xf32>, vector<128x256xf32>, vector<32x256xf32> -> vector<32x256xf32>
    %11 = vector.broadcast %9 : vector<1x256xf32> to vector<32x256xf32>
    %12 = arith.addf %10, %11 : vector<32x256xf32>
    %cst_11 = arith.constant 0.000000e+00 : f32
    %13 = vector.broadcast %cst_11 : f32 to vector<32x256xf32>
    %14 = arith.maximumf %12, %13 : vector<32x256xf32>
    %c0_12 = arith.constant 0 : index
    %c0_13 = arith.constant 0 : index
    %15 = vector.load %arg6[%c0_12, %c0_13] : memref<32x256xf32, #tpu.memory_space<vmem>>, vector<32x256xf32>
    %c0_14 = arith.constant 0 : index
    %c0_15 = arith.constant 0 : index
    %16 = vector.load %arg7[%c0_14, %c0_15] : memref<1x256xf32, #tpu.memory_space<vmem>>, vector<1x256xf32>
    %cst_16 = arith.constant dense<0.000000e+00> : vector<32x256xf32>
    %17 = tpu.matmul %0, %15, %cst_16 {dimension_numbers = #tpu.dot_dimension_numbers<[1], [0], [0], [1], [0, 0, 1, 1], [], []>} : vector<32x32xf32>, vector<32x256xf32>, vector<32x256xf32> -> vector<32x256xf32>
    %18 = vector.broadcast %16 : vector<1x256xf32> to vector<32x256xf32>
    %19 = arith.addf %17, %18 : vector<32x256xf32>
    %20 = arith.addf %14, %19 : vector<32x256xf32>
    %cst_17 = arith.constant 0.000000e+00 : f32
    %21 = vector.broadcast %cst_17 : f32 to vector<32x256xf32>
    %22 = arith.maximumf %20, %21 : vector<32x256xf32>
    %c0_18 = arith.constant 0 : index
    %c0_19 = arith.constant 0 : index
    %23 = vector.load %arg8[%c0_18, %c0_19] : memref<32x256xf32, #tpu.memory_space<vmem>>, vector<32x256xf32>
    tpu.vector_store %arg8[%c0_18, %c0_19], %22 {strides = array<i32>} : memref<32x256xf32, #tpu.memory_space<vmem>>, vector<32x256xf32>,
    return
  }
  func.func @transform_0(%arg0: i32) -> (i32, i32) {
    %c0_i32 = arith.constant 0 : i32
    %c0_i32_0 = arith.constant 0 : i32
    return %arg0, %c0_i32 : i32, i32
  }
  func.func @transform_1(%arg0: i32) -> (i32, i32) {
    %c0_i32 = arith.constant 0 : i32
    %c0_i32_0 = arith.constant 0 : i32
    %c0_i32_1 = arith.constant 0 : i32
    return %c0_i32, %c0_i32_0 : i32, i32
  }
  func.func @transform_2(%arg0: i32) -> (i32, i32) {
    %c0_i32 = arith.constant 0 : i32
    %c0_i32_0 = arith.constant 0 : i32
    %c0_i32_1 = arith.constant 0 : i32
    return %c0_i32, %c0_i32_0 : i32, i32
  }
  func.func @transform_3(%arg0: i32) -> (i32, i32) {
    %c0_i32 = arith.constant 0 : i32
    %c0_i32_0 = arith.constant 0 : i32
    %c0_i32_1 = arith.constant 0 : i32
    return %c0_i32, %c0_i32_0 : i32, i32
  }
  func.func @transform_4(%arg0: i32) -> (i32, i32) {
    %c0_i32 = arith.constant 0 : i32
    %c0_i32_0 = arith.constant 0 : i32
    %c0_i32_1 = arith.constant 0 : i32
    return %c0_i32, %c0_i32_0 : i32, i32
  }
  func.func @transform_5(%arg0: i32) -> (i32, i32) {
    %c0_i32 = arith.constant 0 : i32
    %c0_i32_0 = arith.constant 0 : i32
    %c0_i32_1 = arith.constant 0 : i32
    return %c0_i32, %c0_i32_0 : i32, i32
  }
  func.func @transform_6(%arg0: i32) -> (i32, i32) {
    %c0_i32 = arith.constant 0 : i32
    %c0_i32_0 = arith.constant 0 : i32
    %c0_i32_1 = arith.constant 0 : i32
    return %c0_i32, %c0_i32_0 : i32, i32
  }
  func.func @transform_7(%arg0: i32) -> (i32, i32) {
    %c0_i32 = arith.constant 0 : i32
    %c0_i32_0 = arith.constant 0 : i32
    return %arg0, %c0_i32 : i32, i32
  }
}

</mosaic_0001>

<bundles_post_ra>
// kernel: tpu_custom_call.1
= control target key start
LH: loop header
LB: loop body
LE: loop exit
PB: predicated region body
PF: predicated region fallthrough
CT: control target
= control target key end

     0   :  { %12 = vsyncpa [#allocation3], 0  ;;  %s748_s0 = inlined_call_operand.hbm [shape: f32[32,32], index: 0, kind: input, shape index: {}]   ;;  %s749_s1 = inlined_call_operand.hbm [shape: f32[32,128], index: 1, kind: input, shape index: {}]   ;;  %s750_s2 = inlined_call_operand.vmem [shape: f32[1,128], index: 2, kind: input, shape index: {}]   ;;  %s751_s3 = inlined_call_operand.hbm [shape: f32[128,256], index: 3, kind: input, shape index: {}]   ;;  %s752_s4 = inlined_call_operand.vmem [shape: f32[1,256], index: 4, kind: input, shape index: {}]   ;;  %s753_s5 = inlined_call_operand.hbm [shape: f32[32,256], index: 5, kind: input, shape index: {}]   ;;  %s754_s6 = inlined_call_operand.vmem [shape: f32[1,256], index: 6, kind: input, shape index: {}]   ;;  %s755_s7 = inlined_call_operand.hbm [shape: f32[32,256], index: 7, kind: output, shape index: {}]  }
   0x1   :  { %13 = vsyncpa [#allocation6], 0 }
   0x2   :  { %14 = vsyncpa [#allocation9], 0 }
   0x3   :  { %15 = vsyncpa [#allocation4], 0  ;;  %s641_s24 = smov [#allocation5]   ;;  %s642_s26 = smov [#allocation2]  }
   0x4   :  { %s33_s25 = sshll.u32 %s641_s24, 4  ;;  %s21_s27 = sshll.u32 %s642_s26, 4  ;;  %s34_s25 = int_to_ptr.vmem [resolvable:$true] %s33_s25  ;;  %s22_s27 = int_to_ptr.vmem [resolvable:$true] %s21_s27 }
   0x5   :  { %s541_s28 = scalar_lea.vmem %s34_s25, 512  ;;  %p546_p1 = scmp.lt.s32.totalorder %s34_s25, %s34_s25 }
   0x6   :  { %p542_p0 = scmp.ne.s32.totalorder %s34_s25, %s541_s28  ;;  %p547_p2 = scmp.lt.s32.totalorder %s541_s28, %s541_s28 }
   0x8   :  { %p548_p3 = por %p547_p2, %p546_p1 }
   0xa   :  { %p549_p4 = pnand %p548_p3, %p542_p0 }
   0xc   :  { %552 = shalt.err (!%p549_p4)
}
   0xd   :  { %s643_s29 = smov 128   ;;  %s644_s30 = smov 8  }
   0xe   :  { %39 = dma.hbm_to_vmem [thread:$0]  %s749_s1, 512, %s34_s25, [#allocation6], %s643_s29, %s643_s29, %s644_s30  }
   0xf   :  { %s561_s10 = scalar_lea.vmem %s22_s27, 512  ;;  %p566_p6 = scmp.lt.s32.totalorder %s22_s27, %s22_s27 }
  0x10   :  { %p562_p5 = scmp.ne.s32.totalorder %s22_s27, %s561_s10  ;;  %p567_p7 = scmp.lt.s32.totalorder %s561_s10, %s561_s10 }
  0x12   :  { %p568_p8 = por %p567_p7, %p566_p6 }
  0x14   :  { %p569_p9 = pnand %p568_p8, %p562_p5 }
  0x16   :  { %572 = shalt.err (!%p569_p9)
}
  0x17   :  { %27 = dma.hbm_to_vmem [thread:$0]  %s748_s0, 512, %s22_s27, [#allocation3], %s643_s29, %s643_s29, %s644_s30  }
  0x18   :  { %s645_s13 = smov [#allocation7]  }
  0x19   :  { %s47_s14 = sshll.u32 %s645_s13, 4  ;;  %s48_s14 = int_to_ptr.vmem [resolvable:$true] %s47_s14 }
  0x1a   :  { %s581_s15 = scalar_lea.vmem %s48_s14, 4096  ;;  %p586_p11 = scmp.lt.s32.totalorder %s48_s14, %s48_s14 }
  0x1b   :  { %p582_p10 = scmp.ne.s32.totalorder %s48_s14, %s581_s15  ;;  %p587_p12 = scmp.lt.s32.totalorder %s581_s15, %s581_s15 }
  0x1d   :  { %p588_p13 = por %p587_p12, %p586_p11 }
  0x1f   :  { %p589_p0 = pnand %p588_p13, %p582_p10 }
  0x21   :  { %592 = shalt.err (!%p589_p0)
}
  0x22   :  { %s646_s1 = smov 256   ;;  %s647_s16 = smov 16  }
  0x23   :  { %53 = dma.hbm_to_vmem [thread:$0]  %s751_s3, 4096, %s48_s14, [#allocation6], %s646_s1, %s646_s1, %s647_s16  }
  0x24   :  { %s648_s0 = smov [#allocation8]  }
  0x25   :  { %s61_s19 = sshll.u32 %s648_s0, 4  ;;  %s62_s19 = int_to_ptr.vmem [resolvable:$true] %s61_s19 }
  0x26   :  { %s601_s20 = scalar_lea.vmem %s62_s19, 1024  ;;  %p606_p2 = scmp.lt.s32.totalorder %s62_s19, %s62_s19 }
  0x27   :  { %p602_p1 = scmp.ne.s32.totalorder %s62_s19, %s601_s20  ;;  %p607_p3 = scmp.lt.s32.totalorder %s601_s20, %s601_s20 }
  0x29   :  { %p608_p4 = por %p607_p3, %p606_p2 }
  0x2b   :  { %p609_p5 = pnand %p608_p4, %p602_p1 }
  0x2d   :  { %612 = shalt.err (!%p609_p5)
}
  0x2e   :  { %67 = dma.hbm_to_vmem [thread:$0]  %s753_s5, 1024, %s62_s19, [#allocation9], %s646_s1, %s646_s1, %s647_s16  }
  0x2f   :  { %633 = dma.done.wait [#allocation3], 512  }
  0x30   :  { %634 = vsyncadd [#allocation3], 4294966784 }
  0x31   :  { %635 = dma.done.wait [#allocation6], 4608  }
  0x32   :  { %636 = vsyncadd [#allocation6], 4294962688 }
  0x33   :  { %637 = dma.done.wait [#allocation9], 1024  }
  0x34   :  { %638 = vsyncadd [#allocation9], 4294966272  ;;  %vm97_vm0 = vcmask 261120   ;;  %v89_v0 = vld [vmem:[#allocation5 + $0x18] sm:$0xff]  ;;  %v88_v1 = vld [vmem:[#allocation5 + $0x10] sm:$0xff]  ;;  %v649_v48 = vmov 0.0   ;;  %v233_v62 = vlaneseq }
  0x35   :  { %509 = vmatprep.subr.mxu0 %v89_v0  ;;  %v709_v2 = vld [vmem:[#allocation2] sm:$0xff]  ;;  %v87_v3 = vld [vmem:[#allocation5 + $0x8] sm:$0xff]  ;;  %v230_v4 = vld [vmem:[#allocation7 + $0xf8] sm:$0xff]  ;;  %307 = vmatprep.mubr.f32.mxu1 %v649_v48 }
  0x36   :  { %510 = vmatpush3.msra.mxu0 %v89_v0  ;;  %517 = vmatprep.mubr.msk.f32.mxu0 %vm97_vm0, %v709_v2  ;;  %v229_v5 = vld [vmem:[#allocation7 + $0xf0] sm:$0xff]  ;;  %v228_v6 = vld [vmem:[#allocation7 + $0xe8] sm:$0xff]  ;;  %v227_v7 = vld [vmem:[#allocation7 + $0xe0] sm:$0xff]  ;;  %v234_v0 = vshrl.u32 %v233_v62, 7 }
  0x37   :  { %511 = vmatprep.subr.mxu0 %v88_v1  ;;  %243 = vmatprep.subr.mxu1 %v230_v4  ;;  %v86_v8 = vld [vmem:[#allocation5] sm:$0xff]  ;;  %v226_v9 = vld [vmem:[#allocation7 + $0xd8] sm:$0xff]  ;;  %v225_v10 = vld [vmem:[#allocation7 + $0xd0] sm:$0xff] }
  0x38   :  { %512 = vmatpush3.msra.mxu0 %v88_v1  ;;  %244 = vmatpush1.msra.mxu1 %v229_v5  ;;  %v713_v11 = vld [vmem:[#allocation2 + $0x8] sm:$0xff]  ;;  %v715_v13 = vld [vmem:[#allocation2 + $0x10] sm:$0xff]  ;;  %v223_v14 = vld [vmem:[#allocation7 + $0xc0] sm:$0xff] }
  0x39   :  { %513 = vmatprep.subr.mxu0 %v87_v3  ;;  %245 = vmatprep.subr.mxu1 %v228_v6  ;;  %v224_v12 = vld [vmem:[#allocation7 + $0xc8] sm:$0xff]  ;;  %v222_v15 = vld [vmem:[#allocation7 + $0xb8] sm:$0xff]  ;;  %v221_v16 = vld [vmem:[#allocation7 + $0xb0] sm:$0xff]  ;;  %v239_v6 = vsub.s32 1, %v234_v0 }
  0x3a   :  { %514 = vmatpush3.msra.mxu0 %v87_v3  ;;  %246 = vmatpush1.msra.mxu1 %v227_v7  ;;  %v721_v17 = vld [vmem:[#allocation2 + $0x18] sm:$0xff]  ;;  %v220_v18 = vld [vmem:[#allocation7 + $0xa8] sm:$0xff]  ;;  %v219_v19 = vld [vmem:[#allocation7 + $0xa0] sm:$0xff] }
  0x3b   :  { %515 = vmatprep.subr.mxu0 %v86_v8  ;;  %247 = vmatprep.subr.mxu1 %v226_v9  ;;  %v347_v20 = vld [vmem:[#allocation8 + $0x38] sm:$0xff]  ;;  %v217_v22 = vld [vmem:[#allocation7 + $0x90] sm:$0xff]  ;;  %v216_v23 = vld [vmem:[#allocation7 + $0x88] sm:$0xff] }
  0x3c   :  { %516 = vmatpush3.msra.mxu0 %v86_v8  ;;  %248 = vmatpush1.msra.mxu1 %v225_v10  ;;  %v218_v21 = vld [vmem:[#allocation7 + $0x98] sm:$0xff]  ;;  %v215_v24 = vld [vmem:[#allocation7 + $0x80] sm:$0xff]  ;;  %v213_v26 = vld [vmem:[#allocation7 + $0x70] sm:$0xff] }
  0x3d   :  { %518 = vmatmul.mubr.msk.f32.vlgmr.msra.gmra.mxu0 %vm97_vm0, %v713_v11  ;;  %249 = vmatprep.subr.mxu1 %v224_v12  ;;  %v214_v25 = vld [vmem:[#allocation7 + $0x78] sm:$0xff]  ;;  %v212_v27 = vld [vmem:[#allocation7 + $0x68] sm:$0xff]  ;;  %v211_v28 = vld [vmem:[#allocation7 + $0x60] sm:$0xff] }
  0x3e   :  { %520 = vmatprep.mubr.msk.f32.mxu0 %vm97_vm0, %v715_v13  ;;  %250 = vmatpush1.msra.mxu1 %v223_v14  ;;  %v210_v29 = vld [vmem:[#allocation7 + $0x58] sm:$0xff]  ;;  %v209_v30 = vld [vmem:[#allocation7 + $0x50] sm:$0xff]  ;;  %v208_v31 = vld [vmem:[#allocation7 + $0x48] sm:$0xff] }
  0x3f   :  { %251 = vmatprep.subr.mxu1 %v222_v15  ;;  %384 = vmatprep.subr.mxu0 %v347_v20  ;;  %v207_v32 = vld [vmem:[#allocation7 + $0x40] sm:$0xff]  ;;  %v206_v33 = vld [vmem:[#allocation7 + $0x38] sm:$0xff]  ;;  %v205_v34 = vld [vmem:[#allocation7 + $0x30] sm:$0xff] }
  0x40   :  { %252 = vmatpush1.msra.mxu1 %v221_v16  ;;  %v346_v35 = vld [vmem:[#allocation8 + $0x30] sm:$0xff]  ;;  %v204_v36 = vld [vmem:[#allocation7 + $0x28] sm:$0xff]  ;;  %v203_v38 = vld [vmem:[#allocation7 + $0x20] sm:$0xff] }
  0x41   :  { %521 = vmatmul.mubr.msk.f32.gmra.mxu0 %vm97_vm0, %v721_v17  ;;  %253 = vmatprep.subr.mxu1 %v220_v18  ;;  %v345_v37 = vld [vmem:[#allocation8 + $0x28] sm:$0xff]  ;;  %v344_v39 = vld [vmem:[#allocation8 + $0x20] sm:$0xff]  ;;  %v202_v40 = vld [vmem:[#allocation7 + $0x18] sm:$0xff] }
  0x42   :  { %254 = vmatpush1.msra.mxu1 %v219_v19  ;;  %385 = vmatpush1.msra.mxu0 %v346_v35  ;;  %v343_v41 = vld [vmem:[#allocation8 + $0x18] sm:$0xff]  ;;  %v201_v42 = vld [vmem:[#allocation7 + $0x10] sm:$0xff]  ;;  %v200_v44 = vld [vmem:[#allocation7 + $0x8] sm:$0xff] }
  0x43   :  { %255 = vmatprep.subr.mxu1 %v218_v21  ;;  %386 = vmatprep.subr.mxu0 %v345_v37  ;;  %v342_v43 = vld [vmem:[#allocation8 + $0x10] sm:$0xff]  ;;  %v341_v45 = vld [vmem:[#allocation8 + $0x8] sm:$0xff]  ;;  %v199_v46 = vld [vmem:[#allocation7] sm:$0xff] }
  0x44   :  { %256 = vmatpush1.msra.mxu1 %v217_v22  ;;  %387 = vmatpush1.msra.mxu0 %v344_v39  ;;  %v340_v47 = vld [vmem:[#allocation8] sm:$0xff] }
  0x45   :  { %257 = vmatprep.subr.mxu1 %v216_v23  ;;  %388 = vmatprep.subr.mxu0 %v343_v41  ;;  %v492_v50 = vld [vmem:[%s750_s2] ss:$0 sm:$0xff] }
  0x46   :  { %258 = vmatpush1.msra.mxu1 %v215_v24  ;;  %389 = vmatpush1.msra.mxu0 %v342_v43  ;;  %v231_v3 = vld [vmem:[%s752_s4] sm:$0x3]  ;;  %s650_s4 = smov [#allocation10]  }
  0x47   :  { %259 = vmatprep.subr.mxu1 %v214_v25  ;;  %390 = vmatprep.subr.mxu0 %v341_v45  ;;  %v348_v4 = vld [vmem:[%s754_s6] sm:$0x3]  ;;  %v240_v10 = vrot.slane %v231_v3, %v239_v6  ;;  %s478_s6 = sshll.u32 %s650_s4, 4  ;;  %s479_s6 = int_to_ptr.vmem [resolvable:$true] %s478_s6 }
  0x48   :  { %260 = vmatpush1.msra.mxu1 %v213_v26  ;;  %391 = vmatpush1.msra.mxu0 %v340_v47  ;;  %v357_v12 = vrot.slane %v348_v4, %v239_v6  ;;  %s613_s26 = scalar_lea.vmem %s479_s6, 1024  ;;  %p618_p7 = scmp.lt.s32.totalorder %s479_s6, %s479_s6 }
  0x49   :  { %261 = vmatprep.subr.mxu1 %v212_v27  ;;  %424 = vmatprep.mubr.f32.mxu0 %v649_v48  ;;  %p614_p6 = scmp.ne.s32.totalorder %s479_s6, %s613_s26  ;;  %p619_p8 = scmp.lt.s32.totalorder %s613_s26, %s613_s26 }
  0x4a   :  { %262 = vmatpush1.msra.mxu1 %v211_v28  ;;  %497 = vmatmul.mubr.msk.f32.vlgmr.msra.gmra.mxu0 %vm97_vm0, %v709_v2  ;;  %v235_v2 = vsub.s32 0, %v234_v0 }
  0x4b   :  { %263 = vmatprep.subr.mxu1 %v210_v29  ;;  %430 = vmatprep.mubr.f32.mxu0 %v649_v48  ;;  %p620_p9 = por %p619_p8, %p618_p7 }
  0x4c   :  { %264 = vmatpush1.msra.mxu1 %v209_v30  ;;  %v236_v7 = vrot.slane %v231_v3, %v235_v2  ;;  %v353_v8 = vrot.slane %v348_v4, %v235_v2 }
  0x4d   :  { %265 = vmatprep.subr.mxu1 %v208_v31  ;;  %p621_p10 = pnand %p620_p9, %p614_p6 }
  0x4e   :  { %266 = vmatpush1.msra.mxu1 %v207_v32  ;;  %498 = vmatmul.mubr.msk.f32.gmra.mxu0 %vm97_vm0, %v713_v11 }
  0x4f   :  { %267 = vmatprep.subr.mxu1 %v206_v33  ;;  %436 = vmatprep.mubr.f32.mxu0 %v649_v48 }
  0x50   :  { %268 = vmatpush1.msra.mxu1 %v205_v34 }
  0x51   :  { %269 = vmatprep.subr.mxu1 %v204_v36 }
  0x52   :  { %270 = vmatpush1.msra.mxu1 %v203_v38  ;;  %499 = vmatmul.mubr.msk.f32.gmra.mxu0 %vm97_vm0, %v715_v13 }
  0x53   :  { %271 = vmatprep.subr.mxu1 %v202_v40  ;;  %442 = vmatprep.mubr.f32.mxu0 %v649_v48 }
  0x54   :  { %272 = vmatpush1.msra.mxu1 %v201_v42 }
  0x55   :  { %273 = vmatprep.subr.mxu1 %v200_v44 }
  0x56   :  { %274 = vmatpush1.msra.mxu1 %v199_v46  ;;  %500 = vmatmul.mubr.msk.f32.gmra.mxu0 %vm97_vm0, %v721_v17 }
  0xfd   :  { %v519_v49 = vpop.f32.mrf.mxu0 }
  0xfe   :  { %v182_v54 = vadd.f32 %v519_v49, %v492_v50 }
  0xff   :  { %v176_v51 = vpop.f32.mrf.mxu0 }
 0x100   :  { %v177_v52 = vadd.f32 %v492_v50, %v176_v51  ;;  %v196_v57 = vmax.f32 %v182_v54, 0.0 }
 0x101   :  { %v522_v53 = vpop.f32.mrf.mxu0 }
 0x102   :  { %v195_v55 = vmax.f32 %v177_v52, 0.0  ;;  %v192_v59 = vadd.f32 %v522_v53, %v492_v50 }
 0x103   :  { %v186_v56 = vpop.f32.mrf.mxu0 }
 0x104   :  { %308 = vmatmul.mubr.f32.vlgmr.msra.gmra.mxu1 %v195_v55  ;;  %v187_v58 = vadd.f32 %v492_v50, %v186_v56  ;;  %v198_v61 = vmax.f32 %v192_v59, 0.0 }
 0x105   :  { %313 = vmatprep.mubr.f32.mxu1 %v649_v48 }
 0x106   :  { %v197_v60 = vmax.f32 %v187_v58, 0.0 }
 0x108   :  { %314 = vmatmul.mubr.f32.gmra.mxu1 %v196_v57 }
 0x109   :  { %319 = vmatprep.mubr.f32.mxu1 %v649_v48 }
 0x10a   :  { %v426_v63 = vpop.f32.mrf.mxu0 }
 0x10b   :  { %v427_v14 = vadd.f32 %v426_v63, %v353_v8 }
 0x10c   :  { %320 = vmatmul.mubr.f32.gmra.mxu1 %v197_v60  ;;  %v428_v1 = vpop.f32.mrf.mxu0 }
 0x10d   :  { %325 = vmatprep.mubr.f32.mxu1 %v649_v48  ;;  %v429_v19 = vadd.f32 %v428_v1, %v357_v12 }
 0x10e   :  { %v432_v5 = vpop.f32.mrf.mxu0 }
 0x10f   :  { %v433_v24 = vadd.f32 %v432_v5, %v353_v8 }
 0x110   :  { %326 = vmatmul.mubr.f32.gmra.mxu1 %v198_v61  ;;  %v434_v9 = vpop.f32.mrf.mxu0 }
 0x111   :  { %v435_v31 = vadd.f32 %v434_v9, %v357_v12 }
 0x112   :  { %v438_v16 = vpop.f32.mrf.mxu0 }
 0x113   :  { %v439_v33 = vadd.f32 %v438_v16, %v353_v8 }
 0x114   :  { %v440_v26 = vpop.f32.mrf.mxu0 }
 0x115   :  { %v441_v44 = vadd.f32 %v440_v26, %v357_v12 }
 0x116   :  { %v444_v39 = vpop.f32.mrf.mxu0 }
 0x117   :  { %v445_v46 = vadd.f32 %v444_v39, %v353_v8 }
 0x118   :  { %v446_v52 = vpop.f32.mrf.mxu0 }
 0x119   :  { %v447_v60 = vadd.f32 %v446_v52, %v357_v12 }
 0x1c4   :  { %v309_v11 = vpop.f32.mrf.mxu1 }
 0x1c5   :  { %v310_v13 = vadd.f32 %v309_v11, %v236_v7 }
 0x1c6   :  { %v311_v15 = vpop.f32.mrf.mxu1 }
 0x1c7   :  { %v332_v17 = vmax.f32 %v310_v13, 0.0  ;;  %v312_v18 = vadd.f32 %v311_v15, %v240_v10 }
 0x1c8   :  { %v315_v20 = vpop.f32.mrf.mxu1 }
 0x1c9   :  { %v449_v21 = vadd.f32 %v427_v14, %v332_v17  ;;  %v333_v22 = vmax.f32 %v312_v18, 0.0  ;;  %v316_v23 = vadd.f32 %v315_v20, %v236_v7 }
 0x1ca   :  { %v317_v25 = vpop.f32.mrf.mxu1 }
 0x1cb   :  { %v457_v27 = vmax.f32 %v449_v21, 0.0  ;;  %v450_v28 = vadd.f32 %v429_v19, %v333_v22  ;;  %v334_v29 = vmax.f32 %v316_v23, 0.0  ;;  %v318_v30 = vadd.f32 %v317_v25, %v240_v10 }
 0x1cc   :  { %v321_v32 = vpop.f32.mrf.mxu1 }
 0x1cd   :  { %465 = vst [vmem:[#allocation10] sm:$0xff] %v457_v27  ;;  %v458_v34 = vmax.f32 %v450_v28, 0.0  ;;  %v451_v35 = vadd.f32 %v433_v24, %v334_v29  ;;  %v335_v36 = vmax.f32 %v318_v30, 0.0  ;;  %v322_v37 = vadd.f32 %v321_v32, %v236_v7 }
 0x1ce   :  { %v323_v38 = vpop.f32.mrf.mxu1 }
 0x1cf   :  { %466 = vst [vmem:[#allocation10 + $0x8] sm:$0xff] %v458_v34  ;;  %v459_v40 = vmax.f32 %v451_v35, 0.0  ;;  %v452_v41 = vadd.f32 %v435_v31, %v335_v36  ;;  %v336_v42 = vmax.f32 %v322_v37, 0.0  ;;  %v324_v43 = vadd.f32 %v323_v38, %v240_v10 }
 0x1d0   :  { %v327_v45 = vpop.f32.mrf.mxu1 }
 0x1d1   :  { %467 = vst [vmem:[#allocation10 + $0x10] sm:$0xff] %v459_v40  ;;  %v460_v47 = vmax.f32 %v452_v41, 0.0  ;;  %v453_v48 = vadd.f32 %v439_v33, %v336_v42  ;;  %v337_v49 = vmax.f32 %v324_v43, 0.0  ;;  %v328_v50 = vadd.f32 %v327_v45, %v236_v7 }
 0x1d2   :  { %v329_v51 = vpop.f32.mrf.mxu1 }
 0x1d3   :  { %468 = vst [vmem:[#allocation10 + $0x18] sm:$0xff] %v460_v47  ;;  %v461_v53 = vmax.f32 %v453_v48, 0.0  ;;  %v454_v54 = vadd.f32 %v441_v44, %v337_v49  ;;  %v338_v55 = vmax.f32 %v328_v50, 0.0  ;;  %v330_v56 = vadd.f32 %v329_v51, %v240_v10 }
 0x1d5   :  { %469 = vst [vmem:[#allocation10 + $0x20] sm:$0xff] %v461_v53  ;;  %v462_v57 = vmax.f32 %v454_v54, 0.0  ;;  %v455_v58 = vadd.f32 %v445_v46, %v338_v55  ;;  %v339_v59 = vmax.f32 %v330_v56, 0.0 }
 0x1d7   :  { %470 = vst [vmem:[#allocation10 + $0x28] sm:$0xff] %v462_v57  ;;  %v463_v61 = vmax.f32 %v455_v58, 0.0  ;;  %v456_v62 = vadd.f32 %v447_v60, %v339_v59 }
 0x1d9   :  { %471 = vst [vmem:[#allocation10 + $0x30] sm:$0xff] %v463_v61  ;;  %v464_v63 = vmax.f32 %v456_v62, 0.0 }
 0x1db   :  { %472 = vst [vmem:[#allocation10 + $0x38] sm:$0xff] %v464_v63 }
 0x1dc   :  { %624 = shalt.err (!%p621_p10)
}
 0x1dd   :  { %484 = dma.vmem_to_hbm [thread:$0]  %s479_s6, 1024, %s755_s7, [#allocation4], %s646_s1, %s646_s1, %s647_s16  }
 0x1de   :  { %639 = dma.done.wait [#allocation4], 1024  }
 0x1df   :  { %640 = vsyncadd [#allocation4], 4294966272 }
 0x1e0   :  { %488 = vsyncpa [#allocation3], 1 }
 0x1e1   :  { %489 = vsyncpa [#allocation6], 1 }
 0x1e2   :  { %490 = vsyncpa [#allocation9], 1 }
 0x1e3   :  { %491 = vsyncpa [#allocation4], 1 }

</bundles_post_ra>
